<compile_context>
chip_gen: v7x
topology: tpu7x:2x2x1
jax: 0.10.0
libtpu: 0.0.40
codegen_flags: <defaults>
</compile_context>

<pallas_src>
import jax
import jax.numpy as jnp
from jax import lax
from jax.experimental import pallas as pl
from jax.experimental.pallas import tpu as pltpu


def _round_up(x, m):
    return ((x + m - 1) // m) * m


def _vmem_budget_bytes():
    # ~75% of reported VMEM capacity, leaving headroom for Mosaic internal
    # scratch; fallback (no hw info) is safe for v7x's 64 MiB per-TC VMEM.
    try:
        cap = int(pltpu.get_tpu_info().vmem_capacity_bytes)
    except Exception:
        cap = 64 << 20
    return max((cap * 3) // 4, 32 << 20)


def _linear_kernel(x_ref, w_ref, b_ref, o_ref):
    # x_ref: (tm, K) tile.  w_ref: (N, K) resident (PyTorch layout, contracted
    # on K directly -- no transpose pass).  b_ref: (1, N) resident.
    # o_ref: (tm, N) tile.
    acc = lax.dot_general(
        x_ref[...],
        w_ref[...],
        dimension_numbers=(((1,), (1,)), ((), ())),   # contract K of x with K of W
        preferred_element_type=jnp.float32,
    )
    o_ref[...] = (acc + b_ref[...].astype(jnp.float32)).astype(o_ref.dtype)


def transformer_encoder_forward(x, weight, bias, *, cast_inputs_to_bf16=False,
                                tile_pair_bytes_target=8 << 20):
    """Pallas implementation of `nn.Linear(embed, expansion)(x)`.

    x:      (..., embed_size)             float32
    weight: (expansion_size, embed_size)  float32  (PyTorch layout, NOT transposed)
    bias:   (expansion_size,)             float32
    returns (..., expansion_size)         float32
    """
    *lead, K = x.shape
    N = weight.shape[0]
    M = 1
    for d in lead:
        M *= d

    out_dtype = jnp.float32
    x2d = x.reshape(M, K)
    w_in = weight
    if cast_inputs_to_bf16:
        # Halves HBM read traffic; f32 accumulation + f32 epilogue kept in-kernel.
        x2d = x2d.astype(jnp.bfloat16)
        w_in = weight.astype(jnp.bfloat16)
    b2d = bias.reshape(1, N).astype(jnp.float32)

    in_is = jnp.dtype(x2d.dtype).itemsize
    out_is = jnp.dtype(out_dtype).itemsize

    # --- Tile sizing: aim for a few MiB of (x tile + out tile) per grid step, ---
    # --- then clamp against the per-generation VMEM budget.                   ---
    def vmem_need(rows):
        # Pallas double-buffers every BlockSpec input/output, including the
        # "resident" W and bias, so count 2x on everything.
        return 2 * (rows * K * in_is          # x tile
                    + N * K * in_is           # weight (resident)
                    + N * out_is              # bias  (resident)
                    + rows * N * out_is)      # out tile

    vmem_budget = _vmem_budget_bytes()
    bytes_per_row = K * in_is + N * out_is
    tm = max(8, (tile_pair_bytes_target // bytes_per_row) // 8 * 8)
    tm = min(tm, _round_up(M, 8))
    while tm > 8 and vmem_need(tm) > vmem_budget:
        tm = max(8, _round_up(tm // 2, 8))

    need = vmem_need(tm)
    vmem_limit = int(max(min(vmem_budget, 2 * need), need + (2 << 20), 16 << 20))

    grid = (pl.cdiv(M, tm),)

    cost = pl.CostEstimate(
        flops=2 * M * K * N,
        transcendentals=0,
        bytes_accessed=M * K * in_is + N * K * in_is + N * out_is + M * N * out_is,
    )

    out2d = pl.pallas_call(
        _linear_kernel,
        out_shape=jax.ShapeDtypeStruct((M, N), out_dtype),
        grid=grid,
        in_specs=[
            pl.BlockSpec((tm, K), lambda i: (i, 0)),   # x: tiled over M (ragged tail masked)
            pl.BlockSpec((N, K), lambda i: (0, 0)),    # W: resident across grid
            pl.BlockSpec((1, N), lambda i: (0, 0)),    # bias: resident across grid
        ],
        out_specs=pl.BlockSpec((tm, N), lambda i: (i, 0)),
        compiler_params=pltpu.CompilerParams(
            dimension_semantics=("parallel",),
            vmem_limit_bytes=vmem_limit,
        ),
        cost_estimate=cost,
    )(x2d, w_in, b2d)

    return out2d.reshape(*lead, N)


def _reference(x, weight, bias):
    # Plain-JAX reference of nn.Linear: x @ W.T + b
    return jnp.einsum("...k,nk->...n", x, weight) + bias


if __name__ == "__main__":
    embed_size = 32
    expansion_size = 64
    batch, seq = 2, 8

    key = jax.random.PRNGKey(0)
    kx, kw, kb = jax.random.split(key, 3)

    # Deterministic synthetic parameters (shapes from nn.Linear(embed, expansion)).
    x = jax.random.normal(kx, (batch, seq, embed_size), dtype=jnp.float32)
    weight = jax.random.normal(kw, (expansion_size, embed_size), dtype=jnp.float32) * 0.05
    bias = jax.random.normal(kb, (expansion_size,), dtype=jnp.float32) * 0.05

    out = transformer_encoder_forward(x, weight, bias)
    out = jax.block_until_ready(out)

    ref = _reference(x, weight, bias)
    assert out.shape == (batch, seq, expansion_size), out.shape
    assert jnp.allclose(out, ref, atol=1e-5, rtol=1e-5), "mismatch vs reference"

    print("KERNEL_OK")
</pallas_src>

<mosaic_0001>
module attributes {stable_mosaic.version = 11 : i64} {
  func.func @_linear_kernel(%arg0: i32, %arg1: memref<16x32xf32, #tpu.memory_space<vmem>>, %arg2: memref<64x32xf32, #tpu.memory_space<vmem>>, %arg3: memref<1x64xf32, #tpu.memory_space<vmem>>, %arg4: memref<16x64xf32, #tpu.memory_space<vmem>>) attributes {dimension_semantics = [#tpu.dimension_semantics<parallel>], iteration_bounds = array<i64: 1>, scalar_prefetch = 0 : i64, scratch_operands = 0 : i64, tpu.core_type = #tpu.core_type<tc>, window_params = [{transform_indices = @transform_0, window_bounds = array<i64: 16, 32>}, {pipeline_mode = #tpu.pipeline_mode<synchronous>, transform_indices = @transform_1, window_bounds = array<i64: 64, 32>}, {pipeline_mode = #tpu.pipeline_mode<synchronous>, transform_indices = @transform_2, window_bounds = array<i64: 1, 64>}, {transform_indices = @transform_3, window_bounds = array<i64: 16, 64>}]} {
    %c0 = arith.constant 0 : index
    %c0_0 = arith.constant 0 : index
    %0 = vector.load %arg1[%c0, %c0_0] : memref<16x32xf32, #tpu.memory_space<vmem>>, vector<16x32xf32>
    %c0_1 = arith.constant 0 : index
    %c0_2 = arith.constant 0 : index
    %1 = vector.load %arg2[%c0_1, %c0_2] : memref<64x32xf32, #tpu.memory_space<vmem>>, vector<64x32xf32>
    %cst = arith.constant dense<0.000000e+00> : vector<16x64xf32>
    %2 = tpu.matmul %0, %1, %cst {dimension_numbers = #tpu.dot_dimension_numbers<[1], [1], [0], [0], [0, 0, 1, 0], [], []>} : vector<16x32xf32>, vector<64x32xf32>, vector<16x64xf32> -> vector<16x64xf32>
    %c0_3 = arith.constant 0 : index
    %c0_4 = arith.constant 0 : index
    %3 = vector.load %arg3[%c0_3, %c0_4] : memref<1x64xf32, #tpu.memory_space<vmem>>, vector<1x64xf32>
    %4 = vector.broadcast %3 : vector<1x64xf32> to vector<16x64xf32>
    %5 = arith.addf %2, %4 : vector<16x64xf32>
    %c0_5 = arith.constant 0 : index
    %c0_6 = arith.constant 0 : index
    %6 = vector.load %arg4[%c0_5, %c0_6] : memref<16x64xf32, #tpu.memory_space<vmem>>, vector<16x64xf32>
    tpu.vector_store %arg4[%c0_5, %c0_6], %5 {strides = array<i32>} : memref<16x64xf32, #tpu.memory_space<vmem>>, vector<16x64xf32>,
    return
  }
  func.func @transform_0(%arg0: i32) -> (i32, i32) {
    %c0_i32 = arith.constant 0 : i32
    %c0_i32_0 = arith.constant 0 : i32
    return %arg0, %c0_i32 : i32, i32
  }
  func.func @transform_1(%arg0: i32) -> (i32, i32) {
    %c0_i32 = arith.constant 0 : i32
    %c0_i32_0 = arith.constant 0 : i32
    %c0_i32_1 = arith.constant 0 : i32
    return %c0_i32, %c0_i32_0 : i32, i32
  }
  func.func @transform_2(%arg0: i32) -> (i32, i32) {
    %c0_i32 = arith.constant 0 : i32
    %c0_i32_0 = arith.constant 0 : i32
    %c0_i32_1 = arith.constant 0 : i32
    return %c0_i32, %c0_i32_0 : i32, i32
  }
  func.func @transform_3(%arg0: i32) -> (i32, i32) {
    %c0_i32 = arith.constant 0 : i32
    %c0_i32_0 = arith.constant 0 : i32
    return %arg0, %c0_i32 : i32, i32
  }
}

</mosaic_0001>

<bundles_post_ra>
// kernel: tpu_custom_call.1
= control target key start
LH: loop header
LB: loop body
LE: loop exit
PB: predicated region body
PF: predicated region fallthrough
CT: control target
= control target key end

     0   :  { %vm32_vm0 = vcmask 261120   ;;  %s340_s0 = inlined_call_operand.vmem [shape: f32[16,32], index: 0, kind: input, shape index: {}]   ;;  %s341_s1 = inlined_call_operand.vmem [shape: f32[64,32], index: 1, kind: input, shape index: {}]   ;;  %s342_s2 = inlined_call_operand.vmem [shape: f32[1,64], index: 2, kind: input, shape index: {}]   ;;  %s343_s3 = inlined_call_operand.hbm [shape: f32[16,64], index: 3, kind: output, shape index: {}]  }
   0x1   :  { %v17_v0 = vld [vmem:[%s341_s1] sm:$0xff]  ;;  %v18_v1 = vld [vmem:[%s341_s1 + $0x8] sm:$0xff]  ;;  %v19_v2 = vld [vmem:[%s341_s1 + $0x10] sm:$0xff] }
   0x2   :  { %v197_v3 = vpack.c.bf16 %v18_v1, %v17_v0  ;;  %vm282_vm1 = vmpackc.low %vm32_vm0, %vm32_vm0  ;;  %v20_v5 = vld [vmem:[%s341_s1 + $0x18] sm:$0xff]  ;;  %v15_v7 = vld [vmem:[%s340_s0] sm:$0xff] }
   0x3   :  { %v203_v6 = vpack.c.bf16 %v20_v5, %v19_v2 }
   0x4   :  { %199 = vmatprep.subr.msk.bf16.mxu0 %vm282_vm1, %v197_v3 }
   0x5   :  { %8 = vsyncpa [#allocation3], 0  ;;  %202 = vmatpush3.bf16.xpose.msk.msra.mxu0 %vm282_vm1, %v197_v3  ;;  %194 = vmatprep.mubr.msk.f32.mxu0 %vm32_vm0, %v15_v7  ;;  %v21_v8 = vld [vmem:[%s341_s1 + $0x20] sm:$0xff]  ;;  %v22_v9 = vld [vmem:[%s341_s1 + $0x28] sm:$0xff]  ;;  %vm138_vm2 = vcmask 523264  }
   0x6   :  { %205 = vmatprep.subr.msk.bf16.mxu0 %vm282_vm1, %v203_v6  ;;  %v209_v10 = vpack.c.bf16 %v22_v9, %v21_v8  ;;  %v23_v11 = vld [vmem:[%s341_s1 + $0x30] sm:$0xff]  ;;  %v24_v12 = vld [vmem:[%s341_s1 + $0x38] sm:$0xff]  ;;  %v16_v14 = vld [vmem:[%s340_s0 + $0x8] sm:$0xff]  ;;  %s248_s1 = smov [#allocation2]  }
   0x7   :  { %v215_v13 = vpack.c.bf16 %v24_v12, %v23_v11  ;;  %v157_v15 = vld [vmem:[%s342_s2] ss:$0 sm:$0xff]  ;;  %s146_s7 = sshll.u32 %s248_s1, 4  ;;  %s147_s7 = int_to_ptr.vmem [resolvable:$true] %s146_s7 }
   0x8   :  { %s224_s8 = scalar_lea.vmem %s147_s7, 256  ;;  %p229_p1 = scmp.lt.s32.totalorder %s147_s7, %s147_s7 }
   0x9   :  { %p225_p0 = scmp.ne.s32.totalorder %s147_s7, %s224_s8  ;;  %p230_p2 = scmp.lt.s32.totalorder %s224_s8, %s224_s8 }
   0xb   :  { %p231_p3 = por %p230_p2, %p229_p1 }
   0xd   :  { %208 = vmatpush3.bf16.xpose.msk.msra.mxu0 %vm282_vm1, %v203_v6  ;;  %p232_p4 = pnand %p231_p3, %p225_p0 }
   0xe   :  { %211 = vmatprep.subr.msk.bf16.mxu0 %vm282_vm1, %v209_v10 }
  0x15   :  { %214 = vmatpush3.bf16.xpose.msk.msra.mxu0 %vm282_vm1, %v209_v10 }
  0x16   :  { %217 = vmatprep.subr.msk.bf16.mxu0 %vm282_vm1, %v215_v13 }
  0x1d   :  { %220 = vmatpush3.bf16.xpose.msk.msra.mxu0 %vm282_vm1, %v215_v13 }
  0x24   :  { %195 = vmatmul.mubr.msk.f32.vlgmr.msra.gmra.mrb[0].mxu0 %vm32_vm0, %v16_v14 }
  0xf7   :  { %v196_v16 = vpop.f32.mrb[0].mxu0 }
  0xf8   :  { %v135_v17 = vadd.f32 %v196_v16, %v157_v15  ;;  %v129_v18 = vpop.f32.mrb[1].mxu0 }
  0xf9   :  { %v130_v19 = vadd.f32 %v157_v15, %v129_v18 }
  0xfa   :  { %140 = vst.msk [vmem:[#allocation2 + $0x8] sm:$0xff] %vm138_vm2, %v135_v17 }
  0xfb   :  { %139 = vst.msk [vmem:[#allocation2] sm:$0xff] %vm138_vm2, %v130_v19 }
  0xfc   :  { %235 = shalt.err (!%p232_p4)
}
  0xfd   :  { %s236_s2 = scalar_lea.hbm %s343_s3, 256 }
  0xfe   :  { %p237_p5 = scmp.ne.s32.totalorder %s343_s3, %s236_s2  ;;  %p240_p6 = scmp.lt.u32.totalorder %s236_s2, %s343_s3 }
 0x100   :  { %p242_p7 = pnand %p240_p6, %p237_p5 }
 0x102   :  { %245 = shalt.err (!%p242_p7)
}
 0x103   :  { %s249_s14 = smov 128   ;;  %s250_s15 = smov 8  }
 0x104   :  { %152 = dma.vmem_to_hbm [thread:$0]  %s147_s7, 256, %s343_s3, [#allocation3], %s249_s14, %s249_s14, %s250_s15  }
 0x105   :  { %246 = dma.done.wait [#allocation3], 256  }
 0x106   :  { %247 = vsyncadd [#allocation3], 4294967040 }
 0x107   :  { %156 = vsyncpa [#allocation3], 1 }

</bundles_post_ra>
